<compile_context>
chip_gen: v5e
topology: v5e:2x2
jax: 0.10.0
libtpu: 0.0.40
codegen_flags: <defaults>
</compile_context>

<pallas_src>
import functools

import jax
import jax.numpy as jnp
from jax.experimental import pallas as pl
from jax.experimental.pallas import tpu as pltpu


def _dpr_kernel(x_ref,      # VMEM [nb, 2, C, T, F]   (2 = real/imag)
                twr_ref,    # VMEM [nb, C, F]  target-beam real weights
                twi_ref,    # VMEM [nb, C, F]  target-beam imag weights
                gram_ref,   # VMEM [C + C*(C-1) + 1, F] packed Gram (+ pad bias row)
                dpr_ref,    # VMEM [nb, T, F]
                targ_ref):  # VMEM [nb, 2, T, F]
    nb, _, C, T, F = x_ref.shape
    bias_row = gram_ref.shape[0] - 1

    @pl.loop(0, nb)
    def _(i):
        # One block at a time: all per-block operands/accumulators are [T, F]
        # (a couple of vregs each), so the working set stays register-resident.
        xb = x_ref[i]                          # [2, C, T, F]
        twr_i = twr_ref[i]                     # [C, F]
        twi_i = twi_ref[i]                     # [C, F]
        xr = [xb[0, c] for c in range(C)]      # [T, F] per channel
        xi = [xb[1, c] for c in range(C)]

        # ---- denominator: sum_b |y_b|^2 via Hermitian channel Gram form ----
        # (cost independent of num_beam; bias row keeps padded lanes finite)
        sum_p = jnp.broadcast_to(gram_ref[bias_row:bias_row + 1, :], (T, F))
        for c in range(C):
            sum_p = sum_p + (xr[c] * xr[c] + xi[c] * xi[c]) * gram_ref[c:c + 1, :]
        k = C
        for c in range(C):
            for d in range(c + 1, C):
                s_r = xr[c] * xr[d] + xi[c] * xi[d]      # Re[x_c conj(x_d)]
                s_i = xi[c] * xr[d] - xr[c] * xi[d]      # Im[x_c conj(x_d)]
                sum_p = (sum_p
                         + s_r * gram_ref[k:k + 1, :]        # 2*Re G[c,d]
                         + s_i * gram_ref[k + 1:k + 2, :])   # -2*Im G[c,d]
                k += 2

        # ---- numerator: target-beam complex beamformer output ----
        u0 = twr_i[0:1, :]
        v0 = twi_i[0:1, :]
        targ_r = xr[0] * u0 - xi[0] * v0
        targ_i = xr[0] * v0 + xi[0] * u0
        for c in range(1, C):
            u = twr_i[c:c + 1, :]
            v = twi_i[c:c + 1, :]
            targ_r = targ_r + xr[c] * u - xi[c] * v
            targ_i = targ_i + xr[c] * v + xi[c] * u

        targ_p = targ_r * targ_r + targ_i * targ_i
        dpr_ref[i] = targ_p * pl.reciprocal(sum_p, approx=False)
        targ_ref[i, 0, :, :] = targ_r
        targ_ref[i, 1, :, :] = targ_i


def _largest_divisor_leq(n, cap):
    cap = max(1, min(n, int(cap)))
    for d in range(cap, 0, -1):
        if n % d == 0:
            return d
    return 1


@functools.partial(jax.jit, static_argnames=("blocks_per_step", "target_tile_bytes"))
def dpr_forward(x, beam_id, bf_weight, *, blocks_per_step=None,
                target_tile_bytes=2 << 20):
    """
    x         : [N, T, 2, F, C]  float32   (real/imag in dim 2)
    beam_id   : [N]              int32
    bf_weight : [B, F, C, 2]     float32   (beamformer weights, real/imag last)
    returns (dpr [N, T, F], targ_bf_out [N, T, 2, F])
    """
    N, T, _, F, C = x.shape
    f32 = jnp.float32
    x = x.astype(f32)
    bf_weight = bf_weight.astype(f32)

    # Lane-dense frequency axis.
    Fp = ((F + 127) // 128) * 128

    # Single relayout of x: [N,T,2,F,C] -> [N,2,C,T,F].
    # TODO(synk): produce x in this layout upstream (or fuse the transpose into
    # its producer / the pallas_call input) to remove this extra HBM pass.
    xk = jnp.transpose(x, (0, 2, 4, 1, 3))

    wr = bf_weight[..., 0]                        # [B, F, C]
    wi = bf_weight[..., 1]

    # Per-block target-beam weights, gathered once in the wrapper: [N, C, F].
    twr = jnp.transpose(wr[beam_id], (0, 2, 1))
    twi = jnp.transpose(wi[beam_id], (0, 2, 1))

    # Hermitian channel Gram matrix G[c,d,f] = sum_b w[b,c,f] * conj(w[b,d,f]).
    hp = jax.lax.Precision.HIGHEST
    gr = (jnp.einsum('bfc,bfd->cdf', wr, wr, precision=hp)
          + jnp.einsum('bfc,bfd->cdf', wi, wi, precision=hp))      # Re G  [C,C,F]
    gi = (jnp.einsum('bfc,bfd->cdf', wi, wr, precision=hp)
          - jnp.einsum('bfc,bfd->cdf', wr, wi, precision=hp))      # Im G  [C,C,F]

    # Pack gram rows: C diagonal Re-entries, then per pair (c<d): 2*Re, -2*Im.
    rows = [gr[c, c] for c in range(C)]
    for c in range(C):
        for d in range(c + 1, C):
            rows.append(2.0 * gr[c, d])
            rows.append(-2.0 * gi[c, d])
    gram = jnp.stack(rows, axis=0)                                 # [C+C*(C-1), F]

    if Fp != F:
        pad = Fp - F
        xk = jnp.pad(xk, ((0, 0), (0, 0), (0, 0), (0, 0), (0, pad)))
        twr = jnp.pad(twr, ((0, 0), (0, 0), (0, pad)))
        twi = jnp.pad(twi, ((0, 0), (0, 0), (0, pad)))
        gram = jnp.pad(gram, ((0, 0), (0, pad)))
    # Bias row: 1.0 in padded lanes so padded-lane dpr is 0 instead of NaN.
    bias = (jnp.arange(Fp) >= F).astype(f32)
    gram = jnp.concatenate([gram, bias[None, :]], axis=0)
    n_gram_rows = gram.shape[0]

    # Blocks per grid step: large enough to amortize per-step overhead, small
    # enough for the v7x VMEM budget, and capped at N//2 so the grid has >= 2
    # steps for v7x's two TensorCores.
    per_block_in_bytes = 2 * C * T * Fp * 4            # x tile
    per_block_out_bytes = 3 * T * Fp * 4               # dpr + targ(real,imag)
    per_block_vmem = 2 * (per_block_in_bytes + per_block_out_bytes)  # dbl-buffered
    vmem_budget = 24 * 1024 * 1024                     # conservative (v7x: 64 MiB)
    max_nb_vmem = max(1, vmem_budget // per_block_vmem)
    if blocks_per_step is None:
        blocks_per_step = max(1, int(target_tile_bytes) // per_block_in_bytes)
    cap = min(int(blocks_per_step), int(max_nb_vmem), max(1, N // 2))
    nb = _largest_divisor_leq(N, cap)
    # TODO(synk): for awkward N (e.g. prime) this degenerates to nb=1; pad N up
    # to a multiple of the target tile instead of shrinking the tile.

    grid_spec = pltpu.PrefetchScalarGridSpec(
        num_scalar_prefetch=0,
        grid=(N // nb,),
        in_specs=[
            pl.BlockSpec((nb, 2, C, T, Fp), lambda g: (g, 0, 0, 0, 0)),   # x
            pl.BlockSpec((nb, C, Fp), lambda g: (g, 0, 0)),               # targ wr
            pl.BlockSpec((nb, C, Fp), lambda g: (g, 0, 0)),               # targ wi
            pl.BlockSpec((n_gram_rows, Fp), lambda g: (0, 0)),            # gram (pinned)
        ],
        out_specs=[
            pl.BlockSpec((nb, T, Fp), lambda g: (g, 0, 0)),               # dpr
            pl.BlockSpec((nb, 2, T, Fp), lambda g: (g, 0, 0, 0)),         # targ r/i
        ],
    )

    dpr, targ = pl.pallas_call(
        _dpr_kernel,
        out_shape=(jax.ShapeDtypeStruct((N, T, Fp), f32),
                   jax.ShapeDtypeStruct((N, 2, T, Fp), f32)),
        grid_spec=grid_spec,
        compiler_params=pltpu.CompilerParams(
            dimension_semantics=("parallel",),
            vmem_limit_bytes=32 * 1024 * 1024,
        ),
    )(xk, twr, twi, gram)

    dpr = dpr[..., :F]
    # Consumer layout is [N, T, 2, F]; one transpose here costs an extra HBM
    # pass over targ only.  TODO(synk): return [N,2,T,F] if the consumer allows.
    targ_bf_out = jnp.transpose(targ[..., :F], (0, 2, 1, 3))
    return dpr, targ_bf_out


def _reference(x, beam_id, bf_weight):
    """Pure-JAX reference matching the (intended) PyTorch forward semantics."""
    hp = jax.lax.Precision.HIGHEST
    xr = x[:, :, 0, :, :]            # [N, T, F, C]
    xi = x[:, :, 1, :, :]
    wr = bf_weight[..., 0]           # [B, F, C]
    wi = bf_weight[..., 1]
    or_ = (jnp.einsum('ntfc,bfc->nbtf', xr, wr, precision=hp)
           - jnp.einsum('ntfc,bfc->nbtf', xi, wi, precision=hp))
    oi_ = (jnp.einsum('ntfc,bfc->nbtf', xr, wi, precision=hp)
           + jnp.einsum('ntfc,bfc->nbtf', xi, wr, precision=hp))
    power = or_ ** 2 + oi_ ** 2                         # [N, B, T, F]
    sum_p = power.sum(axis=1)                           # [N, T, F]
    idx = jnp.arange(x.shape[0])
    targ_p = power[idx, beam_id]                        # [N, T, F]
    targ_out = jnp.stack([or_[idx, beam_id], oi_[idx, beam_id]], axis=2)
    return targ_p / sum_p, targ_out


if __name__ == "__main__":
    # Small shapes consistent with the module:
    num_block = 8        # N
    T = 16               # frames per block
    num_beam = 8         # B
    num_bin = 128        # F
    num_channel = 4      # C

    key = jax.random.PRNGKey(0)
    k_x, k_w, k_b = jax.random.split(key, 3)

    x = jax.random.normal(
        k_x, (num_block, T, 2, num_bin, num_channel), dtype=jnp.float32)
    # Deterministic beamformer weights (Beamformor's fixed weight tensor):
    bf_weight = jax.random.normal(
        k_w, (num_beam, num_bin, num_channel, 2), dtype=jnp.float32) * 0.1
    beam_id = jax.random.randint(k_b, (num_block,), 0, num_beam, dtype=jnp.int32)

    # Default heuristic gives nb=4 -> a 2-step "parallel" grid (exercises the
    # batched-block path and keeps both v7x TensorCores busy).
    dpr, targ_bf_out = dpr_forward(x, beam_id, bf_weight)
    jax.block_until_ready((dpr, targ_bf_out))

    dpr_ref, targ_ref = _reference(x, beam_id, bf_weight)
    assert dpr.shape == (num_block, T, num_bin)
    assert targ_bf_out.shape == (num_block, T, 2, num_bin)
    # rtol slightly relaxed vs 1e-5: the Gram quadratic form reassociates the
    # beam/channel sums relative to the per-beam reference.
    assert jnp.allclose(dpr, dpr_ref, atol=1e-5, rtol=1e-4)
    assert jnp.allclose(targ_bf_out, targ_ref, atol=1e-5, rtol=1e-4)

    print("KERNEL_OK")
</pallas_src>

<mosaic_0001>
module attributes {stable_mosaic.version = 11 : i64} {
  func.func @_dpr_kernel(%arg0: i32, %arg1: memref<4x2x4x16x128xf32, #tpu.memory_space<vmem>>, %arg2: memref<4x4x128xf32, #tpu.memory_space<vmem>>, %arg3: memref<4x4x128xf32, #tpu.memory_space<vmem>>, %arg4: memref<17x128xf32, #tpu.memory_space<vmem>>, %arg5: memref<4x16x128xf32, #tpu.memory_space<vmem>>, %arg6: memref<4x2x16x128xf32, #tpu.memory_space<vmem>>) attributes {dimension_semantics = [#tpu.dimension_semantics<parallel>], iteration_bounds = array<i64: 2>, scalar_prefetch = 0 : i64, scratch_operands = 0 : i64, tpu.core_type = #tpu.core_type<tc>, window_params = [{transform_indices = @transform_0, window_bounds = array<i64: 4, 2, 4, 16, 128>}, {transform_indices = @transform_1, window_bounds = array<i64: 4, 4, 128>}, {transform_indices = @transform_2, window_bounds = array<i64: 4, 4, 128>}, {pipeline_mode = #tpu.pipeline_mode<synchronous>, transform_indices = @transform_3, window_bounds = array<i64: 17, 128>}, {transform_indices = @transform_4, window_bounds = array<i64: 4, 16, 128>}, {transform_indices = @transform_5, window_bounds = array<i64: 4, 2, 16, 128>}]} {
    %c0_i32 = arith.constant 0 : i32
    %c4_i32 = arith.constant 4 : i32
    %0 = arith.addi %c0_i32, %c4_i32 : i32
    %c1_i32 = arith.constant 1 : i32
    scf.for %arg7 = %c0_i32 to %0 step %c1_i32  : i32 {
      %c1_i32_1 = arith.constant 1 : i32
      %1 = arith.muli %arg7, %c1_i32_1 : i32
      %c0_i32_2 = arith.constant 0 : i32
      %2 = arith.addi %c0_i32_2, %1 : i32
      %3 = arith.index_cast %2 : i32 to index
      %c0 = arith.constant 0 : index
      %c0_3 = arith.constant 0 : index
      %c0_4 = arith.constant 0 : index
      %c0_5 = arith.constant 0 : index
      %4 = vector.load %arg1[%3, %c0, %c0_3, %c0_4, %c0_5] : memref<4x2x4x16x128xf32, #tpu.memory_space<vmem>>, vector<1x2x4x16x128xf32>
      %5 = vector.shape_cast %4 : vector<1x2x4x16x128xf32> to vector<2x4x16x128xf32>
      %6 = arith.index_cast %2 : i32 to index
      %c0_6 = arith.constant 0 : index
      %c0_7 = arith.constant 0 : index
      %7 = vector.load %arg2[%6, %c0_6, %c0_7] : memref<4x4x128xf32, #tpu.memory_space<vmem>>, vector<1x4x128xf32>
      %8 = vector.shape_cast %7 : vector<1x4x128xf32> to vector<4x128xf32>
      %9 = arith.index_cast %2 : i32 to index
      %c0_8 = arith.constant 0 : index
      %c0_9 = arith.constant 0 : index
      %10 = vector.load %arg3[%9, %c0_8, %c0_9] : memref<4x4x128xf32, #tpu.memory_space<vmem>>, vector<1x4x128xf32>
      %11 = vector.shape_cast %10 : vector<1x4x128xf32> to vector<4x128xf32>
      %12 = vector.extract_strided_slice %5 {offsets = [0, 0, 0, 0], sizes = [1, 1, 16, 128], strides = [1, 1, 1, 1]} : vector<2x4x16x128xf32> to vector<1x1x16x128xf32>
      %13 = vector.shape_cast %12 : vector<1x1x16x128xf32> to vector<16x128xf32>
      %14 = vector.extract_strided_slice %5 {offsets = [0, 1, 0, 0], sizes = [1, 1, 16, 128], strides = [1, 1, 1, 1]} : vector<2x4x16x128xf32> to vector<1x1x16x128xf32>
      %15 = vector.shape_cast %14 : vector<1x1x16x128xf32> to vector<16x128xf32>
      %16 = vector.extract_strided_slice %5 {offsets = [0, 2, 0, 0], sizes = [1, 1, 16, 128], strides = [1, 1, 1, 1]} : vector<2x4x16x128xf32> to vector<1x1x16x128xf32>
      %17 = vector.shape_cast %16 : vector<1x1x16x128xf32> to vector<16x128xf32>
      %18 = vector.extract_strided_slice %5 {offsets = [0, 3, 0, 0], sizes = [1, 1, 16, 128], strides = [1, 1, 1, 1]} : vector<2x4x16x128xf32> to vector<1x1x16x128xf32>
      %19 = vector.shape_cast %18 : vector<1x1x16x128xf32> to vector<16x128xf32>
      %20 = vector.extract_strided_slice %5 {offsets = [1, 0, 0, 0], sizes = [1, 1, 16, 128], strides = [1, 1, 1, 1]} : vector<2x4x16x128xf32> to vector<1x1x16x128xf32>
      %21 = vector.shape_cast %20 : vector<1x1x16x128xf32> to vector<16x128xf32>
      %22 = vector.extract_strided_slice %5 {offsets = [1, 1, 0, 0], sizes = [1, 1, 16, 128], strides = [1, 1, 1, 1]} : vector<2x4x16x128xf32> to vector<1x1x16x128xf32>
      %23 = vector.shape_cast %22 : vector<1x1x16x128xf32> to vector<16x128xf32>
      %24 = vector.extract_strided_slice %5 {offsets = [1, 2, 0, 0], sizes = [1, 1, 16, 128], strides = [1, 1, 1, 1]} : vector<2x4x16x128xf32> to vector<1x1x16x128xf32>
      %25 = vector.shape_cast %24 : vector<1x1x16x128xf32> to vector<16x128xf32>
      %26 = vector.extract_strided_slice %5 {offsets = [1, 3, 0, 0], sizes = [1, 1, 16, 128], strides = [1, 1, 1, 1]} : vector<2x4x16x128xf32> to vector<1x1x16x128xf32>
      %27 = vector.shape_cast %26 : vector<1x1x16x128xf32> to vector<16x128xf32>
      %c16 = arith.constant 16 : index
      %c0_10 = arith.constant 0 : index
      %28 = vector.load %arg4[%c16, %c0_10] : memref<17x128xf32, #tpu.memory_space<vmem>>, vector<1x128xf32>
      %29 = vector.shape_cast %28 : vector<1x128xf32> to vector<1x128xf32>
      %30 = vector.broadcast %29 : vector<1x128xf32> to vector<16x128xf32>
      %31 = arith.mulf %13, %13 : vector<16x128xf32>
      %32 = arith.mulf %21, %21 : vector<16x128xf32>
      %33 = arith.addf %31, %32 : vector<16x128xf32>
      %c0_11 = arith.constant 0 : index
      %c0_12 = arith.constant 0 : index
      %34 = vector.load %arg4[%c0_11, %c0_12] : memref<17x128xf32, #tpu.memory_space<vmem>>, vector<1x128xf32>
      %35 = vector.broadcast %34 : vector<1x128xf32> to vector<16x128xf32>
      %36 = arith.mulf %33, %35 : vector<16x128xf32>
      %37 = arith.addf %30, %36 : vector<16x128xf32>
      %38 = arith.mulf %15, %15 : vector<16x128xf32>
      %39 = arith.mulf %23, %23 : vector<16x128xf32>
      %40 = arith.addf %38, %39 : vector<16x128xf32>
      %c1 = arith.constant 1 : index
      %c0_13 = arith.constant 0 : index
      %41 = vector.load %arg4[%c1, %c0_13] : memref<17x128xf32, #tpu.memory_space<vmem>>, vector<1x128xf32>
      %42 = vector.broadcast %41 : vector<1x128xf32> to vector<16x128xf32>
      %43 = arith.mulf %40, %42 : vector<16x128xf32>
      %44 = arith.addf %37, %43 : vector<16x128xf32>
      %45 = arith.mulf %17, %17 : vector<16x128xf32>
      %46 = arith.mulf %25, %25 : vector<16x128xf32>
      %47 = arith.addf %45, %46 : vector<16x128xf32>
      %c2 = arith.constant 2 : index
      %c0_14 = arith.constant 0 : index
      %48 = vector.load %arg4[%c2, %c0_14] : memref<17x128xf32, #tpu.memory_space<vmem>>, vector<1x128xf32>
      %49 = vector.broadcast %48 : vector<1x128xf32> to vector<16x128xf32>
      %50 = arith.mulf %47, %49 : vector<16x128xf32>
      %51 = arith.addf %44, %50 : vector<16x128xf32>
      %52 = arith.mulf %19, %19 : vector<16x128xf32>
      %53 = arith.mulf %27, %27 : vector<16x128xf32>
      %54 = arith.addf %52, %53 : vector<16x128xf32>
      %c3 = arith.constant 3 : index
      %c0_15 = arith.constant 0 : index
      %55 = vector.load %arg4[%c3, %c0_15] : memref<17x128xf32, #tpu.memory_space<vmem>>, vector<1x128xf32>
      %56 = vector.broadcast %55 : vector<1x128xf32> to vector<16x128xf32>
      %57 = arith.mulf %54, %56 : vector<16x128xf32>
      %58 = arith.addf %51, %57 : vector<16x128xf32>
      %59 = arith.mulf %13, %15 : vector<16x128xf32>
      %60 = arith.mulf %21, %23 : vector<16x128xf32>
      %61 = arith.addf %59, %60 : vector<16x128xf32>
      %62 = arith.mulf %21, %15 : vector<16x128xf32>
      %63 = arith.mulf %13, %23 : vector<16x128xf32>
      %64 = arith.subf %62, %63 : vector<16x128xf32>
      %c4 = arith.constant 4 : index
      %c0_16 = arith.constant 0 : index
      %65 = vector.load %arg4[%c4, %c0_16] : memref<17x128xf32, #tpu.memory_space<vmem>>, vector<1x128xf32>
      %66 = vector.broadcast %65 : vector<1x128xf32> to vector<16x128xf32>
      %67 = arith.mulf %61, %66 : vector<16x128xf32>
      %68 = arith.addf %58, %67 : vector<16x128xf32>
      %c5 = arith.constant 5 : index
      %c0_17 = arith.constant 0 : index
      %69 = vector.load %arg4[%c5, %c0_17] : memref<17x128xf32, #tpu.memory_space<vmem>>, vector<1x128xf32>
      %70 = vector.broadcast %69 : vector<1x128xf32> to vector<16x128xf32>
      %71 = arith.mulf %64, %70 : vector<16x128xf32>
      %72 = arith.addf %68, %71 : vector<16x128xf32>
      %73 = arith.mulf %13, %17 : vector<16x128xf32>
      %74 = arith.mulf %21, %25 : vector<16x128xf32>
      %75 = arith.addf %73, %74 : vector<16x128xf32>
      %76 = arith.mulf %21, %17 : vector<16x128xf32>
      %77 = arith.mulf %13, %25 : vector<16x128xf32>
      %78 = arith.subf %76, %77 : vector<16x128xf32>
      %c6 = arith.constant 6 : index
      %c0_18 = arith.constant 0 : index
      %79 = vector.load %arg4[%c6, %c0_18] : memref<17x128xf32, #tpu.memory_space<vmem>>, vector<1x128xf32>
      %80 = vector.broadcast %79 : vector<1x128xf32> to vector<16x128xf32>
      %81 = arith.mulf %75, %80 : vector<16x128xf32>
      %82 = arith.addf %72, %81 : vector<16x128xf32>
      %c7 = arith.constant 7 : index
      %c0_19 = arith.constant 0 : index
      %83 = vector.load %arg4[%c7, %c0_19] : memref<17x128xf32, #tpu.memory_space<vmem>>, vector<1x128xf32>
      %84 = vector.broadcast %83 : vector<1x128xf32> to vector<16x128xf32>
      %85 = arith.mulf %78, %84 : vector<16x128xf32>
      %86 = arith.addf %82, %85 : vector<16x128xf32>
      %87 = arith.mulf %13, %19 : vector<16x128xf32>
      %88 = arith.mulf %21, %27 : vector<16x128xf32>
      %89 = arith.addf %87, %88 : vector<16x128xf32>
      %90 = arith.mulf %21, %19 : vector<16x128xf32>
      %91 = arith.mulf %13, %27 : vector<16x128xf32>
      %92 = arith.subf %90, %91 : vector<16x128xf32>
      %c8 = arith.constant 8 : index
      %c0_20 = arith.constant 0 : index
      %93 = vector.load %arg4[%c8, %c0_20] : memref<17x128xf32, #tpu.memory_space<vmem>>, vector<1x128xf32>
      %94 = vector.broadcast %93 : vector<1x128xf32> to vector<16x128xf32>
      %95 = arith.mulf %89, %94 : vector<16x128xf32>
      %96 = arith.addf %86, %95 : vector<16x128xf32>
      %c9 = arith.constant 9 : index
      %c0_21 = arith.constant 0 : index
      %97 = vector.load %arg4[%c9, %c0_21] : memref<17x128xf32, #tpu.memory_space<vmem>>, vector<1x128xf32>
      %98 = vector.broadcast %97 : vector<1x128xf32> to vector<16x128xf32>
      %99 = arith.mulf %92, %98 : vector<16x128xf32>
      %100 = arith.addf %96, %99 : vector<16x128xf32>
      %101 = arith.mulf %15, %17 : vector<16x128xf32>
      %102 = arith.mulf %23, %25 : vector<16x128xf32>
      %103 = arith.addf %101, %102 : vector<16x128xf32>
      %104 = arith.mulf %23, %17 : vector<16x128xf32>
      %105 = arith.mulf %15, %25 : vector<16x128xf32>
      %106 = arith.subf %104, %105 : vector<16x128xf32>
      %c10 = arith.constant 10 : index
      %c0_22 = arith.constant 0 : index
      %107 = vector.load %arg4[%c10, %c0_22] : memref<17x128xf32, #tpu.memory_space<vmem>>, vector<1x128xf32>
      %108 = vector.broadcast %107 : vector<1x128xf32> to vector<16x128xf32>
      %109 = arith.mulf %103, %108 : vector<16x128xf32>
      %110 = arith.addf %100, %109 : vector<16x128xf32>
      %c11 = arith.constant 11 : index
      %c0_23 = arith.constant 0 : index
      %111 = vector.load %arg4[%c11, %c0_23] : memref<17x128xf32, #tpu.memory_space<vmem>>, vector<1x128xf32>
      %112 = vector.broadcast %111 : vector<1x128xf32> to vector<16x128xf32>
      %113 = arith.mulf %106, %112 : vector<16x128xf32>
      %114 = arith.addf %110, %113 : vector<16x128xf32>
      %115 = arith.mulf %15, %19 : vector<16x128xf32>
      %116 = arith.mulf %23, %27 : vector<16x128xf32>
      %117 = arith.addf %115, %116 : vector<16x128xf32>
      %118 = arith.mulf %23, %19 : vector<16x128xf32>
      %119 = arith.mulf %15, %27 : vector<16x128xf32>
      %120 = arith.subf %118, %119 : vector<16x128xf32>
      %c12 = arith.constant 12 : index
      %c0_24 = arith.constant 0 : index
      %121 = vector.load %arg4[%c12, %c0_24] : memref<17x128xf32, #tpu.memory_space<vmem>>, vector<1x128xf32>
      %122 = vector.broadcast %121 : vector<1x128xf32> to vector<16x128xf32>
      %123 = arith.mulf %117, %122 : vector<16x128xf32>
      %124 = arith.addf %114, %123 : vector<16x128xf32>
      %c13 = arith.constant 13 : index
      %c0_25 = arith.constant 0 : index
      %125 = vector.load %arg4[%c13, %c0_25] : memref<17x128xf32, #tpu.memory_space<vmem>>, vector<1x128xf32>
      %126 = vector.broadcast %125 : vector<1x128xf32> to vector<16x128xf32>
      %127 = arith.mulf %120, %126 : vector<16x128xf32>
      %128 = arith.addf %124, %127 : vector<16x128xf32>
      %129 = arith.mulf %17, %19 : vector<16x128xf32>
      %130 = arith.mulf %25, %27 : vector<16x128xf32>
      %131 = arith.addf %129, %130 : vector<16x128xf32>
      %132 = arith.mulf %25, %19 : vector<16x128xf32>
      %133 = arith.mulf %17, %27 : vector<16x128xf32>
      %134 = arith.subf %132, %133 : vector<16x128xf32>
      %c14 = arith.constant 14 : index
      %c0_26 = arith.constant 0 : index
      %135 = vector.load %arg4[%c14, %c0_26] : memref<17x128xf32, #tpu.memory_space<vmem>>, vector<1x128xf32>
      %136 = vector.broadcast %135 : vector<1x128xf32> to vector<16x128xf32>
      %137 = arith.mulf %131, %136 : vector<16x128xf32>
      %138 = arith.addf %128, %137 : vector<16x128xf32>
      %c15 = arith.constant 15 : index
      %c0_27 = arith.constant 0 : index
      %139 = vector.load %arg4[%c15, %c0_27] : memref<17x128xf32, #tpu.memory_space<vmem>>, vector<1x128xf32>
      %140 = vector.broadcast %139 : vector<1x128xf32> to vector<16x128xf32>
      %141 = arith.mulf %134, %140 : vector<16x128xf32>
      %142 = arith.addf %138, %141 : vector<16x128xf32>
      %143 = vector.extract_strided_slice %8 {offsets = [0, 0], sizes = [1, 128], strides = [1, 1]} : vector<4x128xf32> to vector<1x128xf32>
      %144 = vector.extract_strided_slice %11 {offsets = [0, 0], sizes = [1, 128], strides = [1, 1]} : vector<4x128xf32> to vector<1x128xf32>
      %145 = vector.broadcast %143 : vector<1x128xf32> to vector<16x128xf32>
      %146 = arith.mulf %13, %145 : vector<16x128xf32>
      %147 = vector.broadcast %144 : vector<1x128xf32> to vector<16x128xf32>
      %148 = arith.mulf %21, %147 : vector<16x128xf32>
      %149 = arith.subf %146, %148 : vector<16x128xf32>
      %150 = vector.broadcast %144 : vector<1x128xf32> to vector<16x128xf32>
      %151 = arith.mulf %13, %150 : vector<16x128xf32>
      %152 = vector.broadcast %143 : vector<1x128xf32> to vector<16x128xf32>
      %153 = arith.mulf %21, %152 : vector<16x128xf32>
      %154 = arith.addf %151, %153 : vector<16x128xf32>
      %155 = vector.extract_strided_slice %8 {offsets = [1, 0], sizes = [1, 128], strides = [1, 1]} : vector<4x128xf32> to vector<1x128xf32>
      %156 = vector.extract_strided_slice %11 {offsets = [1, 0], sizes = [1, 128], strides = [1, 1]} : vector<4x128xf32> to vector<1x128xf32>
      %157 = vector.broadcast %155 : vector<1x128xf32> to vector<16x128xf32>
      %158 = arith.mulf %15, %157 : vector<16x128xf32>
      %159 = arith.addf %149, %158 : vector<16x128xf32>
      %160 = vector.broadcast %156 : vector<1x128xf32> to vector<16x128xf32>
      %161 = arith.mulf %23, %160 : vector<16x128xf32>
      %162 = arith.subf %159, %161 : vector<16x128xf32>
      %163 = vector.broadcast %156 : vector<1x128xf32> to vector<16x128xf32>
      %164 = arith.mulf %15, %163 : vector<16x128xf32>
      %165 = arith.addf %154, %164 : vector<16x128xf32>
      %166 = vector.broadcast %155 : vector<1x128xf32> to vector<16x128xf32>
      %167 = arith.mulf %23, %166 : vector<16x128xf32>
      %168 = arith.addf %165, %167 : vector<16x128xf32>
      %169 = vector.extract_strided_slice %8 {offsets = [2, 0], sizes = [1, 128], strides = [1, 1]} : vector<4x128xf32> to vector<1x128xf32>
      %170 = vector.extract_strided_slice %11 {offsets = [2, 0], sizes = [1, 128], strides = [1, 1]} : vector<4x128xf32> to vector<1x128xf32>
      %171 = vector.broadcast %169 : vector<1x128xf32> to vector<16x128xf32>
      %172 = arith.mulf %17, %171 : vector<16x128xf32>
      %173 = arith.addf %162, %172 : vector<16x128xf32>
      %174 = vector.broadcast %170 : vector<1x128xf32> to vector<16x128xf32>
      %175 = arith.mulf %25, %174 : vector<16x128xf32>
      %176 = arith.subf %173, %175 : vector<16x128xf32>
      %177 = vector.broadcast %170 : vector<1x128xf32> to vector<16x128xf32>
      %178 = arith.mulf %17, %177 : vector<16x128xf32>
      %179 = arith.addf %168, %178 : vector<16x128xf32>
      %180 = vector.broadcast %169 : vector<1x128xf32> to vector<16x128xf32>
      %181 = arith.mulf %25, %180 : vector<16x128xf32>
      %182 = arith.addf %179, %181 : vector<16x128xf32>
      %183 = vector.extract_strided_slice %8 {offsets = [3, 0], sizes = [1, 128], strides = [1, 1]} : vector<4x128xf32> to vector<1x128xf32>
      %184 = vector.extract_strided_slice %11 {offsets = [3, 0], sizes = [1, 128], strides = [1, 1]} : vector<4x128xf32> to vector<1x128xf32>
      %185 = vector.broadcast %183 : vector<1x128xf32> to vector<16x128xf32>
      %186 = arith.mulf %19, %185 : vector<16x128xf32>
      %187 = arith.addf %176, %186 : vector<16x128xf32>
      %188 = vector.broadcast %184 : vector<1x128xf32> to vector<16x128xf32>
      %189 = arith.mulf %27, %188 : vector<16x128xf32>
      %190 = arith.subf %187, %189 : vector<16x128xf32>
      %191 = vector.broadcast %184 : vector<1x128xf32> to vector<16x128xf32>
      %192 = arith.mulf %19, %191 : vector<16x128xf32>
      %193 = arith.addf %182, %192 : vector<16x128xf32>
      %194 = vector.broadcast %183 : vector<1x128xf32> to vector<16x128xf32>
      %195 = arith.mulf %27, %194 : vector<16x128xf32>
      %196 = arith.addf %193, %195 : vector<16x128xf32>
      %197 = arith.mulf %190, %190 : vector<16x128xf32>
      %198 = arith.mulf %196, %196 : vector<16x128xf32>
      %199 = arith.addf %197, %198 : vector<16x128xf32>
      %200 = tpu.reciprocal %142 : vector<16x128xf32> -> vector<16x128xf32>
      %201 = arith.mulf %199, %200 : vector<16x128xf32>
      %202 = arith.index_cast %2 : i32 to index
      %c0_28 = arith.constant 0 : index
      %c0_29 = arith.constant 0 : index
      %203 = vector.load %arg5[%202, %c0_28, %c0_29] : memref<4x16x128xf32, #tpu.memory_space<vmem>>, vector<1x16x128xf32>
      %204 = vector.shape_cast %203 : vector<1x16x128xf32> to vector<16x128xf32>
      %205 = vector.shape_cast %201 : vector<16x128xf32> to vector<1x16x128xf32>
      tpu.vector_store %arg5[%202, %c0_28, %c0_29], %205 {strides = array<i32>} : memref<4x16x128xf32, #tpu.memory_space<vmem>>, vector<1x16x128xf32>,
      %206 = arith.index_cast %2 : i32 to index
      %c0_30 = arith.constant 0 : index
      %c0_31 = arith.constant 0 : index
      %c0_32 = arith.constant 0 : index
      %207 = vector.load %arg6[%206, %c0_30, %c0_31, %c0_32] : memref<4x2x16x128xf32, #tpu.memory_space<vmem>>, vector<1x1x16x128xf32>
      %208 = vector.shape_cast %207 : vector<1x1x16x128xf32> to vector<16x128xf32>
      %209 = vector.shape_cast %190 : vector<16x128xf32> to vector<1x1x16x128xf32>
      tpu.vector_store %arg6[%206, %c0_30, %c0_31, %c0_32], %209 {strides = array<i32>} : memref<4x2x16x128xf32, #tpu.memory_space<vmem>>, vector<1x1x16x128xf32>,
      %210 = arith.index_cast %2 : i32 to index
      %c1_33 = arith.constant 1 : index
      %c0_34 = arith.constant 0 : index
      %c0_35 = arith.constant 0 : index
      %211 = vector.load %arg6[%210, %c1_33, %c0_34, %c0_35] : memref<4x2x16x128xf32, #tpu.memory_space<vmem>>, vector<1x1x16x128xf32>
      %212 = vector.shape_cast %211 : vector<1x1x16x128xf32> to vector<16x128xf32>
      %213 = vector.shape_cast %196 : vector<16x128xf32> to vector<1x1x16x128xf32>
      tpu.vector_store %arg6[%210, %c1_33, %c0_34, %c0_35], %213 {strides = array<i32>} : memref<4x2x16x128xf32, #tpu.memory_space<vmem>>, vector<1x1x16x128xf32>,
    }
    %c4_i32_0 = arith.constant 4 : i32
    return
  }
  func.func @transform_0(%arg0: i32) -> (i32, i32, i32, i32, i32) {
    %c0_i32 = arith.constant 0 : i32
    %c0_i32_0 = arith.constant 0 : i32
    %c0_i32_1 = arith.constant 0 : i32
    %c0_i32_2 = arith.constant 0 : i32
    %c0_i32_3 = arith.constant 0 : i32
    return %arg0, %c0_i32, %c0_i32_0, %c0_i32_1, %c0_i32_2 : i32, i32, i32, i32, i32
  }
  func.func @transform_1(%arg0: i32) -> (i32, i32, i32) {
    %c0_i32 = arith.constant 0 : i32
    %c0_i32_0 = arith.constant 0 : i32
    %c0_i32_1 = arith.constant 0 : i32
    return %arg0, %c0_i32, %c0_i32_0 : i32, i32, i32
  }
  func.func @transform_2(%arg0: i32) -> (i32, i32, i32) {
    %c0_i32 = arith.constant 0 : i32
    %c0_i32_0 = arith.constant 0 : i32
    %c0_i32_1 = arith.constant 0 : i32
    return %arg0, %c0_i32, %c0_i32_0 : i32, i32, i32
  }
  func.func @transform_3(%arg0: i32) -> (i32, i32) {
    %c0_i32 = arith.constant 0 : i32
    %c0_i32_0 = arith.constant 0 : i32
    %c0_i32_1 = arith.constant 0 : i32
    return %c0_i32, %c0_i32_0 : i32, i32
  }
  func.func @transform_4(%arg0: i32) -> (i32, i32, i32) {
    %c0_i32 = arith.constant 0 : i32
    %c0_i32_0 = arith.constant 0 : i32
    %c0_i32_1 = arith.constant 0 : i32
    return %arg0, %c0_i32, %c0_i32_0 : i32, i32, i32
  }
  func.func @transform_5(%arg0: i32) -> (i32, i32, i32, i32) {
    %c0_i32 = arith.constant 0 : i32
    %c0_i32_0 = arith.constant 0 : i32
    %c0_i32_1 = arith.constant 0 : i32
    %c0_i32_2 = arith.constant 0 : i32
    return %arg0, %c0_i32, %c0_i32_0, %c0_i32_1 : i32, i32, i32, i32
  }
}

</mosaic_0001>

<bundles_post_ra>
// kernel: dpr_forward.1
= control target key start
LH: loop header
LB: loop body
LE: loop exit
PB: predicated region body
PF: predicated region fallthrough
CT: control target
= control target key end

     0   :  { %11 = vsyncpa [#allocation3], 0  ;;  %s1541_s0 = inlined_call_operand.vmem [shape: f32[8,2,4,16,128], index: 0, kind: input, shape index: {}]   ;;  %s1542_s1 = inlined_call_operand.vmem [shape: f32[8,4,128], index: 1, kind: input, shape index: {}]   ;;  %s1543_s2 = inlined_call_operand.vmem [shape: f32[8,4,128], index: 2, kind: input, shape index: {}]   ;;  %s1544_s3 = inlined_call_operand.vmem [shape: f32[17,128], index: 3, kind: input, shape index: {}]   ;;  %s1545_s4 = inlined_call_operand.hbm [shape: f32[8,16,128], index: 4, kind: output, shape index: {0}]   ;;  %s1546_s5 = inlined_call_operand.vmem [shape: f32[8,2,16,128], index: 5, kind: output, shape index: {1}]  }
   0x1   :  { %13 = vsyncpa [#allocation3 + $0x1], 0  ;;  %s991_s18 = smov 0   ;;  %s993_s19 = smov 0  }
   0x2   :  { %s995_s20 = smov 0   ;;  %s997_s21 = smov 0  }
   0x3 LB: > { %1549 = sst [smem:[#allocation5_spill]] %s949_s20  ;;  %s1012_s22 = sadd.s32 4294967295, %s953_s21   ;;  %s953_s21 = sphi %s997_s21, %s1562_s21   ;;  %s949_s20 = sphi %s995_s20, %s1559_s20   ;;  %s945_s19 = sphi %s993_s19, %s1561_s19   ;;  %s941_s18 = sphi %s991_s18, %s1560_s18  }
   0x4   : > { %s785_s23 = sadd.s32 4294967294, %s953_s21   ;;  %s1016_s24 = sadd.s32 1, %s953_s21  }
   0x5   : > { %s125_s25 = sadd.s32 1, %s949_s20  ;;  %s122_s26 = ssub.s32 %s953_s21, %s1016_s24 }
   0x6   : > { %p135_p0 = scmp.ne.s32.totalorder %s949_s20, %s945_s19  ;;  %p123_p1 = scmp.eq.s32.totalorder %s122_s26, 0 }
   0x7   : > { %p136_p2 = scmp.eq.s32.totalorder %s1012_s22, 1  ;;  %p141_p3 = scmp.ne.s32.totalorder %s945_s19, %s941_s18 }
   0x8   : > { %p142_p4 = scmp.eq.s32.totalorder %s785_s23, 1  ;;  %p788_p7 = scmp.ge.s32.totalorder %s953_s21, 1 }
   0x9   : > { %s1027_s27 = scalar_select %p123_p1, %s949_s20, %s125_s25  }
   0xa   : > { %p1029_p5 = por %p136_p2, %p135_p0  ;;  %p1033_p6 = por %p142_p4, %p141_p3 }
   0xb   : > { %1550 = sst [smem:[#allocation6_spill]] %s1027_s27  ;;  %p217_p8 = scmp.lt.s32.totalorder %s953_s21, 3 }
   0xd   : > { %p218_p9 = pnand %p788_p7, %p217_p8 }
   0xe   : > { %s1547_s30 = sand.u32 (!%p218_p9), 1, %s945_s19   ;;  %s790_s6 = sshll.u32 (!%p218_p9), %s1012_s22, 2 }
   0xf   : > { %221 = sbr.rel (%p218_p9) target bundleno = 115 (0x73), region = 36  ;;  %s1043_s7 = sshll.u32 (!%p218_p9), %s1547_s30, 6 }
  0x10   : > { %p263_p10 = scmp.lt.s32.totalorder (!%p218_p9), %s790_s6, 7  ;;  %s253_s20 = scalar_lea.vmem (!%p218_p9), [#allocation2], %s1043_s7 }
  0x11   : > { %s1066_s10 = smov (!%p218_p9), 0  }
  0x14   : > { %s1564_s6 = smov (!%p263_p10, %s790_s6), 7 }
  0x15   : > { %s813_s8 = sshll.u32 %s1564_s6, 7  ;;  %s794_s9 = sshll.u32 %s1564_s6, 2 }
  0x16   : > { %s1048_s12 = scalar_lea.vmem %s1541_s0, %s813_s8  ;;  %s1053_s15 = scalar_lea.vmem %s1542_s1, %s794_s9 }
  0x17   : > { %s1058_s23 = scalar_lea.vmem %s1543_s2, %s794_s9  ;;  %s814_s25 = sshll.u32 %s1564_s6, 5 }
  0x18   : > { %s1063_s27 = scalar_lea.vmem %s1546_s5, %s814_s25 }
  0x19 LB: >> { %s800_s8 = sshll.u32 %s957_s10, 7  ;;  %v1087_v3 = vld [vmem:[%s1544_s3] ss:$0 sm:$0xff]  ;;  %v1092_v4 = vld [vmem:[%s1544_s3 + $0x1] ss:$0 sm:$0xff]  ;;  %s801_s17 = sshll.u32 %s957_s10, 2  ;;  %s957_s10 = sphi %s1066_s10, %s294_s10  }
  0x1a   : >> { %s1073_s11 = scalar_lea.vmem %s1048_s12, %s800_s8  ;;  %v1124_v16 = vld [vmem:[%s1544_s3 + $0x2] ss:$0 sm:$0xff]  ;;  %v1137_v21 = vld [vmem:[%s1544_s3 + $0x3] ss:$0 sm:$0xff]  ;;  %v1146_v24 = vld [vmem:[%s1544_s3 + $0x4] ss:$0 sm:$0xff]  ;;  %s314_s13 = scalar_lea.vmem %s1053_s15, %s801_s17 }
  0x1b   : >> { %v1076_v0 = vld [vmem:[%s1073_s11] sm:$0xff]  ;;  %v1079_v1 = vld [vmem:[%s1073_s11 + $0x10] sm:$0xff]  ;;  %v1191_v49 = vld [vmem:[%s1544_s3 + $0x8] ss:$0 sm:$0xff]  ;;  %s316_s25 = scalar_lea.vmem %s1058_s23, %s801_s17  ;;  %s803_s26 = sshll.u32 %s957_s10, 5 }
  0x1c   : >> { %v1082_v2 = vld [vmem:[%s1073_s11 + $0x20] sm:$0xff]  ;;  %v1095_v5 = vld [vmem:[%s1073_s11 + $0x30] sm:$0xff]  ;;  %v320_v8 = vmul.f32 %v1076_v0, %v1076_v0  ;;  %v332_v9 = vmul.f32 %v1079_v1, %v1079_v1  ;;  %v368_v11 = vmul.f32 %v1079_v1, %v1076_v0  ;;  %v1201_v53 = vld [vmem:[%s1544_s3 + $0x9] ss:$0 sm:$0xff]  ;;  %s802_s8 = sshll.u32 %s957_s10, 4  ;;  %s294_s10 = sadd.s32 1, %s957_s10  }
  0x1d   : >> { %v1098_v6 = vld [vmem:[%s1073_s11 + $0x40] sm:$0xff]  ;;  %v1101_v7 = vld [vmem:[%s1073_s11 + $0x50] sm:$0xff]  ;;  %v344_v10 = vmul.f32 %v1082_v2, %v1082_v2  ;;  %v356_v17 = vmul.f32 %v1095_v5, %v1095_v5  ;;  %v392_v30 = vmul.f32 %v1082_v2, %v1076_v0  ;;  %v416_v47 = vmul.f32 %v1095_v5, %v1076_v0  ;;  %v1211_v59 = vld [vmem:[%s1544_s3 + $0xa] ss:$0 sm:$0xff]  ;;  %s1479_s17 = scalar_lea.vmem %s253_s20, %s802_s8 [#allocation2]  ;;  %p291_p11 = scmp.ge.s32.totalorder %s294_s10, 4  }
  0x1e   : >> { %v1112_v12 = vld [vmem:[%s1073_s11 + $0x60] sm:$0xff]  ;;  %v1115_v13 = vld [vmem:[%s1073_s11 + $0x70] sm:$0xff]  ;;  %v322_v14 = vmul.f32 %v1098_v6, %v1098_v6  ;;  %v334_v15 = vmul.f32 %v1101_v7, %v1101_v7  ;;  %v370_v18 = vmul.f32 %v1101_v7, %v1098_v6  ;;  %v374_v22 = vmul.f32 %v1098_v6, %v1079_v1  ;;  %v1221_v63 = vld [vmem:[%s1544_s3 + $0xb] ss:$0 sm:$0xff]  ;;  %s816_s30 = sshll.u32 (%p291_p11), %s1012_s22, 6  ;;  %s648_s14 = sshll.u32 (%p291_p11), %s253_s20, 4  ;;  %s649_s14 = int_to_ptr.vmem [resolvable:$true] %s648_s14 }
  0x1f   : >> { %v346_v19 = vmul.f32 %v1112_v12, %v1112_v12  ;;  %v358_v20 = vmul.f32 %v1115_v13, %v1115_v13  ;;  %v376_v23 = vmul.f32 %v1101_v7, %v1076_v0  ;;  %v1151_v25 = vld [vmem:[%s1544_s3 + $0x10] ss:$0 sm:$0xff]  ;;  %v1156_v29 = vld [vmem:[%s1544_s3 + $0x5] ss:$0 sm:$0xff]  ;;  %v394_v34 = vmul.f32 %v1112_v12, %v1098_v6  ;;  %v1165_v35 = vld [vmem:[%s1544_s3 + $0x6] ss:$0 sm:$0xff] }
  0x20   : >> { %v324_v26 = vadd.f32 %v322_v14, %v320_v8  ;;  %v336_v27 = vadd.f32 %v334_v15, %v332_v9  ;;  %v372_v28 = vadd.f32 %v370_v18, %v368_v11  ;;  %v398_v39 = vmul.f32 %v1098_v6, %v1082_v2  ;;  %v1182_v46 = vld [vmem:[%s1544_s3 + $0x7] ss:$0 sm:$0xff]  ;;  %v315_v15 = vld [vmem:[%s314_s13] sm:$0xf]  ;;  %s647_s13 = scalar_lea.hbm (%p291_p11), %s1545_s4, %s816_s30  ;;  %s907_s12 = scalar_lea.hbm (%p291_p11), %s1545_s4, 128 }
  0x21   : >> { %v348_v31 = vadd.f32 %v346_v19, %v344_v10  ;;  %v360_v32 = vadd.f32 %v358_v20, %v356_v17  ;;  %v378_v33 = vsub.f32 %v374_v22, %v376_v23  ;;  %v396_v43 = vadd.f32 %v394_v34, %v392_v30  ;;  %v1235_v22 = vld [vmem:[%s1544_s3 + $0xc] ss:$0 sm:$0xff]  ;;  %v317_v23 = vld [vmem:[%s316_s25] sm:$0xf]  ;;  %v1245_v30 = vld [vmem:[%s1544_s3 + $0xd] ss:$0 sm:$0xff] }
  0x22   : >> { %v328_v36 = vmul.f32 %v1087_v3, %v324_v26  ;;  %v340_v37 = vmul.f32 %v1092_v4, %v336_v27  ;;  %v382_v38 = vmul.f32 %v1146_v24, %v372_v28  ;;  %v400_v45 = vmul.f32 %v1112_v12, %v1076_v0  ;;  %s650_s16 = sshll.u32 (%p291_p11), %s647_s13, 4  ;;  %s1557_s25 = sand.u32 (%p291_p11), 1, %s945_s19   ;;  %s651_s16 = int_to_ptr.hbm [resolvable:$true] %s650_s16 }
  0x23   : >> { %v352_v40 = vmul.f32 %v1124_v16, %v348_v31  ;;  %v364_v41 = vmul.f32 %v1137_v21, %v360_v32  ;;  %v388_v42 = vmul.f32 %v1156_v29, %v378_v33  ;;  %v418_v48 = vmul.f32 %v1115_v13, %v1098_v6 }
  0x24   : >> { %v330_v44 = vadd.f32 %v1151_v25, %v328_v36  ;;  %v406_v50 = vmul.f32 %v1165_v35, %v396_v43  ;;  %v422_v51 = vmul.f32 %v1098_v6, %v1095_v5  ;;  %v424_v52 = vmul.f32 %v1115_v13, %v1076_v0  ;;  %v1266_v43 = vld [vmem:[%s1544_s3 + $0xf] ss:$0 sm:$0xff] }
  0x25   : >> { %v440_v54 = vmul.f32 %v1082_v2, %v1079_v1  ;;  %v402_v56 = vsub.f32 %v398_v39, %v400_v45  ;;  %v420_v57 = vadd.f32 %v418_v48, %v416_v47  ;;  %v442_v58 = vmul.f32 %v1112_v12, %v1101_v7 }
  0x26   : >> { %v342_v55 = vadd.f32 %v340_v37, %v330_v44  ;;  %v426_v60 = vsub.f32 %v422_v51, %v424_v52  ;;  %v446_v61 = vmul.f32 %v1101_v7, %v1082_v2  ;;  %v448_v62 = vmul.f32 %v1112_v12, %v1079_v1  ;;  %v1259_v37 = vld [vmem:[%s1544_s3 + $0xe] ss:$0 sm:$0xff] }
  0x27   : >> { %v464_v8 = vmul.f32 %v1095_v5, %v1079_v1  ;;  %v412_v10 = vmul.f32 %v1182_v46, %v402_v56  ;;  %v430_v11 = vmul.f32 %v1191_v49, %v420_v57  ;;  %v444_v14 = vadd.f32 %v442_v58, %v440_v54 }
  0x28   : >> { %v354_v9 = vadd.f32 %v352_v40, %v342_v55  ;;  %v436_v17 = vmul.f32 %v1201_v53, %v426_v60  ;;  %v450_v18 = vsub.f32 %v446_v61, %v448_v62  ;;  %v466_v19 = vmul.f32 %v1115_v13, %v1101_v7 }
  0x29   : >> { %v470_v20 = vmul.f32 %v1101_v7, %v1095_v5  ;;  %v1238_v27 = vmul.f32 %v1211_v59, %v444_v14  ;;  %v472_v28 = vmul.f32 %v1115_v13, %v1079_v1  ;;  %v488_v31 = vmul.f32 %v1095_v5, %v1082_v2 }
  0x2a   : >> { %v366_v26 = vadd.f32 %v364_v41, %v354_v9  ;;  %v1250_v32 = vmul.f32 %v1221_v63, %v450_v18  ;;  %v468_v33 = vadd.f32 %v466_v19, %v464_v8  ;;  %v490_v34 = vmul.f32 %v1115_v13, %v1112_v12 }
  0x2b   : >> { %v494_v36 = vmul.f32 %v1112_v12, %v1095_v5  ;;  %v474_v40 = vsub.f32 %v470_v20, %v472_v28  ;;  %v496_v41 = vmul.f32 %v1115_v13, %v1082_v2  ;;  %v1268_v44 = vperm.slane %v315_v15, 0 }
  0x2c   : >> { %v384_v39 = vadd.f32 %v382_v38, %v366_v26  ;;  %v1271_v45 = vmul.f32 %v1235_v22, %v468_v33  ;;  %v492_v47 = vadd.f32 %v490_v34, %v488_v31  ;;  %v1273_v48 = vperm.slane %v317_v23, 0 }
  0x2d   : >> { %v1275_v51 = vperm.slane %v315_v15, 1  ;;  %v1278_v52 = vmul.f32 %v1245_v30, %v474_v40  ;;  %v498_v54 = vsub.f32 %v494_v36, %v496_v41  ;;  %v513_v55 = vmul.f32 %v1268_v44, %v1076_v0  ;;  %v1325_v40 = vld [vmem:[%s1073_s11 + $0x18] sm:$0xff] }
  0x2e   : >> { %v390_v38 = vadd.f32 %v388_v42, %v384_v39  ;;  %v1283_v56 = vmul.f32 %v1259_v37, %v492_v47  ;;  %v516_v57 = vmul.f32 %v1273_v48, %v1098_v6  ;;  %v520_v58 = vmul.f32 %v1273_v48, %v1076_v0 }
  0x2f   : >> { %v522_v60 = vmul.f32 %v1268_v44, %v1098_v6  ;;  %v1292_v61 = vmul.f32 %v1266_v43, %v498_v54  ;;  %v527_v62 = vmul.f32 %v1275_v51, %v1079_v1  ;;  %v1296_v8 = vperm.slane %v317_v23, 1 }
  0x30   : >> { %v408_v42 = vadd.f32 %v406_v50, %v390_v38  ;;  %v518_v9 = vsub.f32 %v513_v55, %v516_v57  ;;  %v540_v18 = vmul.f32 %v1275_v51, %v1101_v7  ;;  %v1300_v0 = vperm.slane %v315_v15, 2  ;;  %v1340_v57 = vld [vmem:[%s1073_s11 + $0x38] sm:$0xff] }
  0x31   : >> { %v524_v14 = vadd.f32 %v522_v60, %v520_v58  ;;  %v532_v50 = vmul.f32 %v1296_v8, %v1101_v7  ;;  %v536_v19 = vmul.f32 %v1296_v8, %v1079_v1  ;;  %v1306_v20 = vperm.slane %v317_v23, 2  ;;  %v1318_v7 = vld [vmem:[%s1073_s11 + $0x48] sm:$0xff] }
  0x32   : >> { %v414_v6 = vadd.f32 %v412_v10, %v408_v42  ;;  %v529_v26 = vadd.f32 %v527_v62, %v518_v9  ;;  %v545_v28 = vmul.f32 %v1300_v0, %v1082_v2  ;;  %v558_v31 = vmul.f32 %v1300_v0, %v1112_v12  ;;  %v1315_v10 = vld [vmem:[%s1073_s11 + $0x8] sm:$0xff] }
  0x33   : >> { %v1312_v33 = vperm.slane %v315_v15, 3  ;;  %v538_v34 = vadd.f32 %v536_v19, %v524_v14  ;;  %v550_v36 = vmul.f32 %v1306_v20, %v1112_v12  ;;  %v554_v39 = vmul.f32 %v1306_v20, %v1082_v2  ;;  %v1337_v12 = vld [vmem:[%s1073_s11 + $0x28] sm:$0xff] }
  0x34   : >> { %v432_v1 = vadd.f32 %v430_v11, %v414_v6  ;;  %v534_v41 = vsub.f32 %v529_v26, %v532_v50  ;;  %v1329_v47 = vperm.slane %v317_v23, 3  ;;  %v1334_v11 = vld [vmem:[%s1073_s11 + $0x58] sm:$0xff]  ;;  %v1343_v2 = vld [vmem:[%s1073_s11 + $0x68] sm:$0xff]  ;;  %v321_v58 = vmul.f32 %v1315_v10, %v1315_v10 }
  0x35   : >> { %v563_v15 = vmul.f32 %v1312_v33, %v1095_v5  ;;  %v576_v38 = vmul.f32 %v1312_v33, %v1115_v13  ;;  %v542_v55 = vadd.f32 %v540_v18, %v538_v34  ;;  %v323_v23 = vmul.f32 %v1318_v7, %v1318_v7  ;;  %v1357_v18 = vld [vmem:[%s1073_s11 + $0x78] sm:$0xff]  ;;  %s1378_s11 = scalar_lea.vmem %s1063_s27, %s803_s26  ;;  %s629_s26 = scalar_lea.sflag (%p291_p11), [#allocation3], %s1557_s25 }
  0x36   : >> { %v438_v54 = vadd.f32 %v436_v17, %v432_v1  ;;  %v547_v60 = vadd.f32 %v545_v28, %v534_v41  ;;  %v568_v42 = vmul.f32 %v1329_v47, %v1115_v13  ;;  %v572_v17 = vmul.f32 %v1329_v47, %v1095_v5 }
  0x37   : >> { %v333_v62 = vmul.f32 %v1325_v40, %v1325_v40  ;;  %v556_v14 = vadd.f32 %v554_v39, %v542_v55  ;;  %v325_v6 = vadd.f32 %v323_v23, %v321_v58  ;;  %v335_v50 = vmul.f32 %v1334_v11, %v1334_v11 }
  0x38   : >> { %v456_v9 = vadd.f32 %v1238_v27, %v438_v54  ;;  %v552_v19 = vsub.f32 %v547_v60, %v550_v36  ;;  %v345_v26 = vmul.f32 %v1337_v12, %v1337_v12  ;;  %v347_v5 = vmul.f32 %v1343_v2, %v1343_v2 }
  0x39   : >> { %v357_v13 = vmul.f32 %v1340_v57, %v1340_v57  ;;  %v560_v28 = vadd.f32 %v558_v31, %v556_v14  ;;  %v329_v1 = vmul.f32 %v1087_v3, %v325_v6  ;;  %v337_v34 = vadd.f32 %v335_v50, %v333_v62 }
  0x3a   : >> { %v462_v27 = vadd.f32 %v1250_v32, %v456_v9  ;;  %v565_v39 = vadd.f32 %v563_v15, %v552_v19  ;;  %v349_v41 = vadd.f32 %v347_v5, %v345_v26  ;;  %v359_v36 = vmul.f32 %v1357_v18, %v1357_v18 }
  0x3b   : >> { %v369_v54 = vmul.f32 %v1325_v40, %v1315_v10  ;;  %v574_v58 = vadd.f32 %v572_v17, %v560_v28  ;;  %v331_v23 = vadd.f32 %v1151_v25, %v329_v1  ;;  %v341_v60 = vmul.f32 %v1092_v4, %v337_v34 }
  0x3c   : >> { %v480_v55 = vadd.f32 %v1271_v45, %v462_v27  ;;  %v570_v3 = vsub.f32 %v565_v39, %v568_v42  ;;  %v353_v32 = vmul.f32 %v1124_v16, %v349_v41  ;;  %v361_v31 = vadd.f32 %v359_v36, %v357_v13 }
  0x3d   : >> { %v371_v15 = vmul.f32 %v1334_v11, %v1318_v7  ;;  %v578_v9 = vadd.f32 %v576_v38, %v574_v58  ;;  %v343_v45 = vadd.f32 %v341_v60, %v331_v23  ;;  %v375_v25 = vmul.f32 %v1318_v7, %v1325_v40 }
  0x3e   : >> { %v486_v62 = vadd.f32 %v1278_v52, %v480_v55  ;;  %v580_v17 = vmul.f32 %v570_v3, %v570_v3  ;;  %v365_v4 = vmul.f32 %v1137_v21, %v361_v31  ;;  %v377_v42 = vmul.f32 %v1334_v11, %v1315_v10  ;;  %622 = vst [vmem:[%s1378_s11] sm:$0xff] %v570_v3 }
  0x3f   : >> { %v373_v14 = vadd.f32 %v371_v15, %v369_v54  ;;  %v582_v6 = vmul.f32 %v578_v9, %v578_v9  ;;  %v355_v50 = vadd.f32 %v353_v32, %v343_v45  ;;  %v393_v52 = vmul.f32 %v1337_v12, %v1315_v10  ;;  %805 = vst [vmem:[%s1378_s11 + $0x10] sm:$0xff] %v578_v9 }
  0x40   : >> { %v504_v16 = vadd.f32 %v1283_v56, %v486_v62  ;;  %v379_v38 = vsub.f32 %v375_v25, %v377_v42  ;;  %v395_v26 = vmul.f32 %v1343_v2, %v1318_v7  ;;  %v399_v21 = vmul.f32 %v1318_v7, %v1337_v12 }
  0x41   : >> { %v383_v19 = vmul.f32 %v1146_v24, %v373_v14  ;;  %v367_v13 = vadd.f32 %v365_v4, %v355_v50  ;;  %v401_v56 = vmul.f32 %v1343_v2, %v1315_v10  ;;  %v417_v1 = vmul.f32 %v1340_v57, %v1315_v10 }
  0x42   : >> { %v510_v5 = vadd.f32 %v1292_v61, %v504_v16  ;;  %v389_v27 = vmul.f32 %v1156_v29, %v379_v38  ;;  %v397_v28 = vadd.f32 %v395_v26, %v393_v52  ;;  %v419_v24 = vmul.f32 %v1357_v18, %v1318_v7 }
  0x43   : >> { %v1407_v34 = vadd.f32 %v582_v6, %v580_v17  ;;  %v385_v41 = vadd.f32 %v383_v19, %v367_v13  ;;  %v403_v36 = vsub.f32 %v399_v21, %v401_v56  ;;  %v423_v29 = vmul.f32 %v1318_v7, %v1340_v57 }
  0x44   : >> { %883 = vrcp.f32 %v510_v5  ;;  %v595_v39 = vand.u32 2147483647, %v510_v5  ;;  %v407_v61 = vmul.f32 %v1165_v35, %v397_v28  ;;  %v421_v54 = vadd.f32 %v419_v24, %v417_v1 }
  0x45   : >> { %vm591_vm0 = vweird.f32 %v510_v5  ;;  %v597_v55 = vand.u32 2147483648, %v510_v5  ;;  %v425_v58 = vmul.f32 %v1357_v18, %v1315_v10  ;;  %v391_v23 = vadd.f32 %v389_v27, %v385_v41 }
  0x46   : >> { %v413_v60 = vmul.f32 %v1182_v46, %v403_v36  ;;  %v431_v3 = vmul.f32 %v1191_v49, %v421_v54  ;;  %v441_v32 = vmul.f32 %v1337_v12, %v1325_v40  ;;  %v443_v35 = vmul.f32 %v1343_v2, %v1334_v11 }
  0x47   : >> { %v427_v31 = vsub.f32 %v423_v29, %v425_v58  ;;  %v447_v15 = vmul.f32 %v1334_v11, %v1337_v12  ;;  %v449_v62 = vmul.f32 %v1343_v2, %v1325_v40  ;;  %vm1424_vm1 = vcmp.eq.f32.partialorder %v595_v39, 8.507059e+37 }
  0x48   : >> { %v409_v46 = vadd.f32 %v407_v61, %v391_v23  ;;  %v465_v49 = vmul.f32 %v1340_v57, %v1325_v40  ;;  %v467_v45 = vmul.f32 %v1357_v18, %v1334_v11  ;;  %v471_v25 = vmul.f32 %v1334_v11, %v1340_v57 }
  0x49   : >> { %v598_v4 = vor.u32 1.1754944e-38, %v597_v55  ;;  %v445_v14 = vadd.f32 %v443_v35, %v441_v32  ;;  %v451_v42 = vsub.f32 %v447_v15, %v449_v62  ;;  %v473_v16 = vmul.f32 %v1357_v18, %v1325_v40 }
  0x4a   : >> { %v884_v17 = vpop.eup %883  ;;  %v415_v50 = vadd.f32 %v413_v60, %v409_v46  ;;  %v437_v52 = vmul.f32 %v1201_v53, %v427_v31  ;;  %v469_v38 = vadd.f32 %v467_v45, %v465_v49  ;;  %v489_v21 = vmul.f32 %v1340_v57, %v1337_v12 }
  0x4b   : >> { %v587_v6 = vmul.f32 %v884_v17, %v510_v5  ;;  %vm592_vm2 = vweird.f32 %v884_v17  ;;  %v455_v19 = vmul.f32 %v1211_v59, %v445_v14  ;;  %v475_v26 = vsub.f32 %v471_v25, %v473_v16 }
  0x4c   : >> { %v433_v56 = vadd.f32 %v431_v3, %v415_v50  ;;  %v461_v27 = vmul.f32 %v1221_v63, %v451_v42  ;;  %v491_v28 = vmul.f32 %v1357_v18, %v1343_v2  ;;  %v479_v1 = vmul.f32 %v1235_v22, %v469_v38  ;;  %vm1454_vm3 = vmor %vm591_vm0, %vm592_vm2 }
  0x4d   : >> { %v588_v13 = vsub.f32 1.0, %v587_v6  ;;  %v495_v53 = vmul.f32 %v1343_v2, %v1340_v57  ;;  %v497_v59 = vmul.f32 %v1357_v18, %v1337_v12  ;;  %v514_v24 = vmul.f32 %v1268_v44, %v1315_v10 }
  0x4e   : >> { %v439_v41 = vadd.f32 %v437_v52, %v433_v56  ;;  %v493_v36 = vadd.f32 %v491_v28, %v489_v21  ;;  %v517_v63 = vmul.f32 %v1273_v48, %v1318_v7  ;;  %v485_v22 = vmul.f32 %v1245_v30, %v475_v26 }
  0x4f   : >> { %v589_v39 = vmul.f32 %v884_v17, %v588_v13  ;;  %v521_v54 = vmul.f32 %v1273_v48, %v1315_v10  ;;  %v523_v55 = vmul.f32 %v1268_v44, %v1318_v7  ;;  %v528_v29 = vmul.f32 %v1275_v51, %v1325_v40 }
  0x50   : >> { %v457_v23 = vadd.f32 %v455_v19, %v439_v41  ;;  %v499_v5 = vsub.f32 %v495_v53, %v497_v59  ;;  %v519_v60 = vsub.f32 %v514_v24, %v517_v63  ;;  %v503_v3 = vmul.f32 %v1259_v37, %v493_v36 }
  0x51   : >> { %v590_v58 = vadd.f32 %v884_v17, %v589_v39  ;;  %v525_v32 = vadd.f32 %v523_v55, %v521_v54  ;;  %v533_v30 = vmul.f32 %v1296_v8, %v1334_v11  ;;  %v537_v48 = vmul.f32 %v1296_v8, %v1325_v40 }
  0x52   : >> { %v463_v10 = vadd.f32 %v461_v27, %v457_v23  ;;  %v530_v7 = vadd.f32 %v528_v29, %v519_v60  ;;  %v541_v31 = vmul.f32 %v1275_v51, %v1334_v11  ;;  %v546_v15 = vmul.f32 %v1300_v0, %v1337_v12 }
  0x53   : >> { %v594_v44 = vsel %vm1454_vm3, %v884_v17, %v590_v58  ;;  %v539_v37 = vadd.f32 %v537_v48, %v525_v32  ;;  %v551_v8 = vmul.f32 %v1306_v20, %v1343_v2  ;;  %v555_v51 = vmul.f32 %v1306_v20, %v1337_v12 }
  0x54   : >> { %v599_v35 = vsel %vm1424_vm1, %v598_v4, %v594_v44  ;;  %v481_v62 = vadd.f32 %v479_v1, %v463_v10  ;;  %v535_v46 = vsub.f32 %v530_v7, %v533_v30  ;;  %v559_v9 = vmul.f32 %v1300_v0, %v1343_v2 }
  0x55   : >> { %v614_v40 = vmul.f32 %v599_v35, %v1407_v34  ;;  %v543_v11 = vadd.f32 %v541_v31, %v539_v37  ;;  %v509_v45 = vmul.f32 %v1266_v43, %v499_v5  ;;  %v564_v17 = vmul.f32 %v1312_v33, %v1340_v57 }
  0x56   : >> { %v487_v49 = vadd.f32 %v485_v22, %v481_v62  ;;  %v548_v25 = vadd.f32 %v546_v15, %v535_v46  ;;  %v573_v4 = vmul.f32 %v1329_v47, %v1340_v57  ;;  %v569_v12 = vmul.f32 %v1329_v47, %v1357_v18 }
  0x57   : >> { %618 = vst [vmem:[%s1479_s17] sm:$0xff] %v614_v40  ;;  %v557_v34 = vadd.f32 %v555_v51, %v543_v11  ;;  %v577_v2 = vmul.f32 %v1312_v33, %v1357_v18 }
  0x58   : >> { %v505_v14 = vadd.f32 %v503_v3, %v487_v49  ;;  %v553_v20 = vsub.f32 %v548_v25, %v551_v8 }
  0x59   : >> { %v561_v0 = vadd.f32 %v559_v9, %v557_v34 }
  0x5a   : >> { %v511_v43 = vadd.f32 %v509_v45, %v505_v14  ;;  %v566_v42 = vadd.f32 %v564_v17, %v553_v20 }
  0x5b   : >> { %v575_v16 = vadd.f32 %v573_v4, %v561_v0 }
  0x5c   : >> { %v571_v6 = vsub.f32 %v566_v42, %v569_v12  ;;  %885 = vrcp.f32 %v511_v43  ;;  %vm605_vm4 = vweird.f32 %v511_v43  ;;  %v609_v57 = vand.u32 2147483647, %v511_v43 }
  0x5d   : >> { %v579_v50 = vadd.f32 %v577_v2, %v575_v16  ;;  %v611_v19 = vand.u32 2147483648, %v511_v43 }
  0x5e   : >> { %623 = vst [vmem:[%s1378_s11 + $0x8] sm:$0xff] %v571_v6  ;;  %v581_v26 = vmul.f32 %v571_v6, %v571_v6  ;;  %vm610_vm7 = vcmp.eq.f32.partialorder %v609_v57, 8.507059e+37 }
  0x5f   : >> { %806 = vst [vmem:[%s1378_s11 + $0x18] sm:$0xff] %v579_v50  ;;  %v583_v47 = vmul.f32 %v579_v50, %v579_v50  ;;  %v612_v33 = vor.u32 1.1754944e-38, %v611_v19  ;;  %s901_s11 = sshra.s32 (%p291_p11), %s651_s16, 4  ;;  %s902_s11 = int_to_ptr.hbm [resolvable:$true] %s901_s11 }
  0x60   : > { %s903_s10 = scalar_lea.hbm (%p291_p11), %s902_s11, 64  ;;  %p908_p1 = scmp.lt.s32.totalorder (%p291_p11), %s902_s11, %s1545_s4 }
  0x61   : >> { %v585_v18 = vadd.f32 %v583_v47, %v581_v26  ;;  %p904_p12 = scmp.ne.s32.totalorder (%p291_p11), %s902_s11, %s903_s10  ;;  %p909_p2 = scmp.lt.s32.totalorder (%p291_p11), %s907_s12, %s903_s10 }
  0x62   : >> { %v886_v52 = vpop.eup %885 }
  0x63   : >> { %v601_v38 = vmul.f32 %v886_v52, %v511_v43  ;;  %vm606_vm5 = vweird.f32 %v886_v52  ;;  %p905_p13 = pnand (%p291_p11), %p904_p12, %p1029_p5  ;;  %p910_p3 = por (%p291_p11), %p909_p2, %p908_p1 }
  0x64   : >> { %vm607_vm6 = vmor %vm605_vm4, %vm606_vm5 }
  0x65   : >> { %v602_v21 = vsub.f32 1.0, %v601_v38  ;;  %p906_p0 = pneg (%p291_p11), %p905_p13 }
  0x67   : >> { %v603_v13 = vmul.f32 %v886_v52, %v602_v21  ;;  %p911_p4 = pnand (%p291_p11), %p910_p3, %p906_p0 }
  0x69   : >> { %v604_v56 = vadd.f32 %v886_v52, %v603_v13 }
  0x6b   : >> { %v608_v27 = vsel %vm607_vm6, %v886_v52, %v604_v56  ;;  %293 = sbr.rel (!%p291_p11) target bundleno = 25 (0x19), region = 102 }
  0x6c   : >> { %v613_v28 = vsel %vm610_vm7, %v612_v33, %v608_v27 }
  0x6d   : >> { %v615_v1 = vmul.f32 %v613_v28, %v585_v18 }
  0x6f   : >> { %619 = vst [vmem:[%s1479_s17 + $0x8] sm:$0xff] %v615_v1 }
  0x70   : > { %914 = shalt.err (!%p911_p4)
}
  0x71   : > { %s959_s20 = smov 128   ;;  %s960_s7 = smov 8  }
  0x72   : > { %817 = dma.vmem_to_hbm [thread:$0]  (%p1029_p5), %s649_s14, 1024, %s651_s16, %s629_s26, %s959_s20, %s959_s20, %s960_s7  }
  0x73 PF: > { %p823_p7 = scmp.ge.s32.totalorder %s953_s21, 2  ;;  %s669_s8 = sand.u32 1, %s941_s18  }
  0x74   : > { %s670_s17 = scalar_lea.sflag [#allocation3], %s669_s8 }
  0x75   : > { %p820_p8 = pnand %p823_p7, %p1033_p6 }
  0x77   : > { %p821_p9 = pneg %p820_p8 }
  0x79   : > { %936 = dma.done.wait (%p821_p9), %s670_s17, 1024  }
  0x7a   : > { %938 = vsyncadd (%p821_p9), %s670_s17, 4294966272  ;;  %s1558_s30 = sld [smem:[#allocation5_spill]]  ;;  %p16_p10 = scmp.ge.s32.totalorder %s1016_s24, 4  }
  0x7b   : > { %s1559_s20 = sld [smem:[#allocation6_spill]]  ;;  %s1560_s18 = smov %s945_s19 }
  0x7c   : > { %s1562_s21 = smov %s1016_s24  ;;  %18 = sbr.rel (!%p16_p10) target bundleno = 3 (0x3), region = 113 }
  0x80   : > { %s1561_s19 = smov %s1558_s30 }
  0x81   :  { %685 = vsyncpa [#allocation3], 1 }
  0x82   :  { %687 = vsyncpa [#allocation3 + $0x1], 1 }

</bundles_post_ra>
